<compile_context>
chip_gen: v5e
topology: v5e:2x2
jax: 0.10.0
libtpu: 0.0.40
codegen_flags: <defaults>
</compile_context>

<pallas_src>
import functools

import jax
import jax.numpy as jnp
import numpy as np
from jax import lax
from jax.experimental import pallas as pl
from jax.experimental.pallas import tpu as pltpu


def _matmul_bias_kernel(x_ref, w_ref, b_ref, o_ref):
    """x_ref: (TM, Kdim)  w_ref: (Kdim, Nout)  b_ref: (1, Nout)  o_ref: (TM, Nout)."""
    acc = jnp.dot(x_ref[...], w_ref[...], preferred_element_type=jnp.float32)
    o_ref[...] = (acc + b_ref[...].astype(jnp.float32)).astype(o_ref.dtype)


def _pick_row_tile(m_rows):
    """Largest (8-multiple) tile that still gives >=2 grid steps, else full."""
    for cand in (256, 128, 64, 32, 16, 8):
        if m_rows % cand == 0 and m_rows // cand >= 2:
            return cand
    return m_rows


def conv_layer_forward(x_nchw, weight_oikk, bias, kernel_size):
    """Reproduces Conv_Layer.forward (pad (1,0,1,0) then Conv2d) for NCHW x."""
    N, C_in, H, W = x_nchw.shape
    C_out = weight_oikk.shape[0]
    K = int(kernel_size)

    H_pad, W_pad = H + 1, W + 1
    H_out, W_out = H_pad - K + 1, W_pad - K + 1

    # ---------- wrapper-side layout (fused by XLA, no in-kernel relayout) ----------
    # NCHW -> NHWC, asymmetric zero pad (top=1, left=1)
    x_nhwc = jnp.transpose(x_nchw, (0, 2, 3, 1))                      # (N,H,W,Cin)
    x_pad = jnp.pad(x_nhwc, ((0, 0), (1, 0), (1, 0), (0, 0)))         # (N,H_pad,W_pad,Cin)

    # x2[(n,ho), (kh,wp,c)] = x_pad[n, ho+kh, wp, c]
    rows = jnp.stack([x_pad[:, kh:kh + H_out] for kh in range(K)], axis=2)
    Kdim = K * W_pad * C_in
    M = N * H_out
    x2 = rows.reshape(M, Kdim)                                        # (M, Kdim)

    # Block-Toeplitz weight: Wmat[(kh,wp,c), (wo,co)] = w[co,c,kh,wp-wo] (else 0)
    w_kkio = jnp.transpose(weight_oikk, (2, 3, 1, 0))                 # (K,K,Cin,Cout)
    sel = np.zeros((K, W_pad, W_out), dtype=np.float32)
    for kw in range(K):
        sel[kw, np.arange(W_out) + kw, np.arange(W_out)] = 1.0
    # labels: w[a=kh,b=kw,c=Cin,d=Cout], sel[b=kw,e=wp,f=wo] -> (kh,wp,Cin,wo,Cout)
    Wmat = jnp.einsum("abcd,bef->aecfd", w_kkio, jnp.asarray(sel, w_kkio.dtype))
    Nout = W_out * C_out
    Wmat = Wmat.reshape(Kdim, Nout)                                   # (Kdim, Nout)

    b2 = jnp.tile(bias, W_out).reshape(1, Nout)                       # (1, Nout)

    # ---------- Pallas call: tiled lane-dense matmul ----------
    TM = _pick_row_tile(M)
    grid = (M // TM,)

    cost = pl.CostEstimate(
        flops=2 * M * Kdim * Nout,
        transcendentals=0,
        bytes_accessed=4 * (M * Kdim + Kdim * Nout + Nout + M * Nout),
    )

    out2 = pl.pallas_call(
        _matmul_bias_kernel,
        out_shape=jax.ShapeDtypeStruct((M, Nout), x_nchw.dtype),
        grid_spec=pltpu.PrefetchScalarGridSpec(
            num_scalar_prefetch=0,
            grid=grid,
            in_specs=[
                pl.BlockSpec((TM, Kdim), lambda i: (i, 0)),     # row tile of x2
                pl.BlockSpec((Kdim, Nout), lambda i: (0, 0)),   # full weight, resident
                pl.BlockSpec((1, Nout), lambda i: (0, 0)),      # bias, resident
            ],
            out_specs=pl.BlockSpec((TM, Nout), lambda i: (i, 0)),
        ),
        compiler_params=pltpu.CompilerParams(
            dimension_semantics=("parallel",),
            vmem_limit_bytes=32 * 1024 * 1024,
        ),
        cost_estimate=cost,
    )(x2, Wmat, b2)

    # back to NCHW to match the PyTorch module
    out_nhwc = out2.reshape(N, H_out, W_out, C_out)
    return jnp.transpose(out_nhwc, (0, 3, 1, 2))


def _reference_conv(x_nchw, weight_oikk, bias, kernel_size):
    """Pure-JAX reference (lax.conv) for correctness checking."""
    x_pad = jnp.pad(x_nchw, ((0, 0), (0, 0), (1, 0), (1, 0)))
    out = lax.conv_general_dilated(
        x_pad, weight_oikk, window_strides=(1, 1), padding="VALID",
        dimension_numbers=("NCHW", "OIHW", "NCHW"),
    )
    return out + bias.reshape(1, -1, 1, 1)


if __name__ == "__main__":
    # Small shapes consistent with the module.
    N, C_in, H, W = 2, 4, 16, 16
    C_out, K = 8, 2  # kernel_size=2 with pad (1,0,1,0) keeps spatial size

    key = jax.random.PRNGKey(0)
    kx, kw, kb = jax.random.split(key, 3)

    x = jax.random.normal(kx, (N, C_in, H, W), dtype=jnp.float32)

    # Deterministic init mimicking nn.Conv2d default: U(-1/sqrt(fan_in), 1/sqrt(fan_in))
    fan_in = C_in * K * K
    bound = 1.0 / np.sqrt(fan_in)
    weight = jax.random.uniform(kw, (C_out, C_in, K, K), jnp.float32, -bound, bound)
    bias = jax.random.uniform(kb, (C_out,), jnp.float32, -bound, bound)

    out = conv_layer_forward(x, weight, bias, K)
    out = jax.block_until_ready(out)

    ref = jax.block_until_ready(_reference_conv(x, weight, bias, K))
    assert out.shape == (N, C_out, H, W), out.shape
    np.testing.assert_allclose(np.asarray(out), np.asarray(ref), rtol=1e-5, atol=1e-5)

    print("KERNEL_OK")
</pallas_src>

<mosaic_0001>
module attributes {stable_mosaic.version = 11 : i64} {
  func.func @_matmul_bias_kernel(%arg0: i32, %arg1: memref<16x136xf32, #tpu.memory_space<vmem>>, %arg2: memref<136x128xf32, #tpu.memory_space<vmem>>, %arg3: memref<1x128xf32, #tpu.memory_space<vmem>>, %arg4: memref<16x128xf32, #tpu.memory_space<vmem>>) attributes {dimension_semantics = [#tpu.dimension_semantics<parallel>], iteration_bounds = array<i64: 2>, scalar_prefetch = 0 : i64, scratch_operands = 0 : i64, tpu.core_type = #tpu.core_type<tc>, window_params = [{transform_indices = @transform_0, window_bounds = array<i64: 16, 136>}, {pipeline_mode = #tpu.pipeline_mode<synchronous>, transform_indices = @transform_1, window_bounds = array<i64: 136, 128>}, {pipeline_mode = #tpu.pipeline_mode<synchronous>, transform_indices = @transform_2, window_bounds = array<i64: 1, 128>}, {transform_indices = @transform_3, window_bounds = array<i64: 16, 128>}]} {
    %c0 = arith.constant 0 : index
    %c0_0 = arith.constant 0 : index
    %0 = vector.load %arg1[%c0, %c0_0] : memref<16x136xf32, #tpu.memory_space<vmem>>, vector<16x136xf32>
    %c0_1 = arith.constant 0 : index
    %c0_2 = arith.constant 0 : index
    %1 = vector.load %arg2[%c0_1, %c0_2] : memref<136x128xf32, #tpu.memory_space<vmem>>, vector<136x128xf32>
    %cst = arith.constant dense<0.000000e+00> : vector<16x128xf32>
    %2 = tpu.matmul %0, %1, %cst {dimension_numbers = #tpu.dot_dimension_numbers<[1], [0], [0], [1], [0, 0, 1, 1], [], []>} : vector<16x136xf32>, vector<136x128xf32>, vector<16x128xf32> -> vector<16x128xf32>
    %c0_3 = arith.constant 0 : index
    %c0_4 = arith.constant 0 : index
    %3 = vector.load %arg3[%c0_3, %c0_4] : memref<1x128xf32, #tpu.memory_space<vmem>>, vector<1x128xf32>
    %4 = vector.broadcast %3 : vector<1x128xf32> to vector<16x128xf32>
    %5 = arith.addf %2, %4 : vector<16x128xf32>
    %c0_5 = arith.constant 0 : index
    %c0_6 = arith.constant 0 : index
    %6 = vector.load %arg4[%c0_5, %c0_6] : memref<16x128xf32, #tpu.memory_space<vmem>>, vector<16x128xf32>
    tpu.vector_store %arg4[%c0_5, %c0_6], %5 {strides = array<i32>} : memref<16x128xf32, #tpu.memory_space<vmem>>, vector<16x128xf32>,
    return
  }
  func.func @transform_0(%arg0: i32) -> (i32, i32) {
    %c0_i32 = arith.constant 0 : i32
    %c0_i32_0 = arith.constant 0 : i32
    return %arg0, %c0_i32 : i32, i32
  }
  func.func @transform_1(%arg0: i32) -> (i32, i32) {
    %c0_i32 = arith.constant 0 : i32
    %c0_i32_0 = arith.constant 0 : i32
    %c0_i32_1 = arith.constant 0 : i32
    return %c0_i32, %c0_i32_0 : i32, i32
  }
  func.func @transform_2(%arg0: i32) -> (i32, i32) {
    %c0_i32 = arith.constant 0 : i32
    %c0_i32_0 = arith.constant 0 : i32
    %c0_i32_1 = arith.constant 0 : i32
    return %c0_i32, %c0_i32_0 : i32, i32
  }
  func.func @transform_3(%arg0: i32) -> (i32, i32) {
    %c0_i32 = arith.constant 0 : i32
    %c0_i32_0 = arith.constant 0 : i32
    return %arg0, %c0_i32 : i32, i32
  }
}

</mosaic_0001>

<bundles_post_ra>
// kernel: tpu_custom_call.1
= control target key start
LH: loop header
LB: loop body
LE: loop exit
PB: predicated region body
PF: predicated region fallthrough
CT: control target
= control target key end

     0   :  { %8 = vsyncpa [#allocation3], 0  ;;  %s803_s0 = inlined_call_operand.hbm [shape: f32[32,136], index: 0, kind: input, shape index: {}]   ;;  %s804_s1 = inlined_call_operand.hbm [shape: f32[136,128], index: 1, kind: input, shape index: {}]   ;;  %s805_s2 = inlined_call_operand.vmem [shape: f32[1,128], index: 2, kind: input, shape index: {}]   ;;  %s806_s3 = inlined_call_operand.hbm [shape: f32[32,128], index: 3, kind: output, shape index: {}]  }
   0x1   :  { %10 = vsyncpa [#allocation3 + $0x1], 0 }
   0x2   :  { %11 = vsyncpa [#allocation6], 0 }
   0x3   :  { %12 = vsyncpa [#allocation4], 0 }
   0x4   :  { %14 = vsyncpa [#allocation4 + $0x1], 0  ;;  %s651_s12 = smov 0   ;;  %s653_s13 = smov 0  }
   0x5   :  { %s655_s14 = smov 0   ;;  %s657_s15 = smov 0  }
   0x6 LB: > { %s672_s16 = sadd.s32 4294967295, %s622_s15   ;;  %s390_s17 = sadd.s32 4294967294, %s622_s15   ;;  %s622_s15 = sphi %s657_s15, %s816_s15   ;;  %s618_s14 = sphi %s655_s14, %s815_s14   ;;  %s614_s13 = sphi %s653_s13, %s814_s13   ;;  %s610_s12 = sphi %s651_s12, %s813_s12  }
   0x7   : > { %p40_p0 = scmp.ne.s32.totalorder %s614_s13, %s610_s12  ;;  %p41_p1 = scmp.eq.s32.totalorder %s672_s16, 0 }
   0x8   : > { %p106_p2 = scmp.eq.s32.totalorder %s672_s16, 1  ;;  %p112_p3 = scmp.eq.s32.totalorder %s390_s17, 1 }
   0x9   : > { %p681_p4 = por %p41_p1, %p40_p0  ;;  %p391_p5 = scmp.ge.s32.totalorder %s622_s15, 1 }
   0xa   : > { %p686_p6 = por %p112_p3, %p40_p0  ;;  %p119_p7 = scmp.lt.s32.totalorder %s622_s15, 3 }
   0xb   : > { %s130_s22 = sshll.u32 %s804_s1, 4  ;;  %s624_s24 = smov [#allocation5]   ;;  %s131_s22 = int_to_ptr.hbm [resolvable:$true] %s130_s22 }
   0xc   : > { %p694_p8 = pnand %p391_p5, %p119_p7  ;;  %s132_s25 = sshll.u32 %s624_s24, 4  ;;  %s133_s25 = int_to_ptr.vmem [resolvable:$true] %s132_s25 }
   0xd   : > { %s704_s26 = sadd.s32 1, %s622_s15   ;;  %s625_s27 = smov 128  }
   0xe   : > { %p436_p9 = pneg %p694_p8  ;;  %s626_s28 = smov 8  }
   0xf   : > { %s24_s29 = ssub.s32 %s622_s15, %s704_s26  ;;  %s27_s30 = sadd.s32 1, %s618_s14 }
  0x10   : > { %p437_p10 = pnand %p436_p9, %p41_p1  ;;  %p25_p12 = scmp.eq.s32.totalorder %s24_s29, 0 }
  0x11   : > { %p34_p13 = scmp.ne.s32.totalorder %s618_s14, %s614_s13  ;;  %p35_p0 = scmp.eq.s32.totalorder %s622_s15, 0 }
  0x12   : > { %439 = dma.hbm_to_vmem [thread:$0]  (!%p437_p10), %s131_s22, 2176, %s133_s25, [#allocation6], %s625_s27, %s625_s27, %s626_s28  }
  0x13   : > { %p449_p3 = scmp.lt.s32.totalorder %s622_s15, 2  ;;  %p36_p5 = por %p35_p0, %p34_p13 }
  0x14   : > { %s714_s4 = scalar_select %p25_p12, %s618_s14, %s27_s30  }
  0x15   : > { %p718_p7 = por %p106_p2, %p34_p13  ;;  %s149_s6 = sand.u32 1, %s618_s14  }
  0x16   : > { %s410_s7 = sshll.u32 %s622_s15, 5  ;;  %s394_s8 = sshll.u32 %s149_s6, 5 }
  0x17   : > { %s159_s11 = scalar_lea.hbm %s803_s0, %s410_s7  ;;  %s153_s20 = scalar_lea.vmem [#allocation2], %s394_s8 }
  0x18   : > { %s160_s17 = sshll.u32 %s159_s11, 4  ;;  %s162_s21 = sshll.u32 %s153_s20, 4  ;;  %s161_s17 = int_to_ptr.hbm [resolvable:$true] %s160_s17  ;;  %s163_s21 = int_to_ptr.vmem [resolvable:$true] %s162_s21 }
  0x19   : > { %p729_p9 = pnand %p449_p3, %p36_p5  ;;  %s150_s24 = scalar_lea.sflag [#allocation3], %s149_s6 }
  0x1a   : > { %s522_s25 = sshra.s32 %s161_s17, 4  ;;  %s529_s30 = scalar_lea.hbm %s803_s0, 64  ;;  %s523_s25 = int_to_ptr.hbm [resolvable:$true] %s522_s25 }
  0x1b   : > { %s524_s27 = scalar_lea.hbm %s523_s25, 32  ;;  %p526_p10 = pneg %p729_p9 }
  0x1c   : > { %p525_p2 = scmp.ne.s32.totalorder %s523_s25, %s524_s27  ;;  %p530_p0 = scmp.lt.s32.totalorder %s523_s25, %s803_s0 }
  0x1d   : > { %p531_p3 = scmp.lt.s32.totalorder %s529_s30, %s524_s27 }
  0x1e   : > { %p527_p12 = pnand %p526_p10, %p525_p2 }
  0x1f   : > { %p532_p5 = por %p531_p3, %p530_p0 }
  0x20   : > { %p528_p13 = pneg %p527_p12 }
  0x22   : > { %p533_p11 = pnand %p532_p5, %p528_p13 }
  0x24   : > { %536 = shalt.err (!%p533_p11)
}
  0x25   : > { %s627_s6 = smov 256   ;;  %s628_s9 = smov 16  }
  0x26   : > { %443 = dma.hbm_to_vmem [thread:$0]  (!%p729_p9), %s161_s17, 512, %s163_s21, %s150_s24, %s627_s6, %s627_s6, %s628_s9  }
  0x27   : > { %174 = sbr.rel (%p694_p8) target bundleno = 219 (0xdb), region = 32  ;;  %s746_s10 = sand.u32 (!%p694_p8), 1, %s614_s13  }
  0x28   : > { %s399_s11 = sshll.u32 (!%p694_p8), %s746_s10, 5  ;;  %s177_s20 = scalar_lea.sflag (!%p694_p8), [#allocation3], %s746_s10 }
  0x29   : > { %s750_s25 = scalar_lea.vmem (!%p694_p8), [#allocation2], %s399_s11 }
  0x2c   : > { %597 = dma.done.wait (%p681_p4), %s177_s20, 512  }
  0x2d   : > { %599 = vsyncadd (%p681_p4), %s177_s20, 4294966784 }
  0x2e   : > { %601 = dma.done.wait (%p41_p1), [#allocation6], 2176  }
  0x2f   : > { %603 = vsyncadd (%p41_p1), [#allocation6], 4294965120  ;;  %v230_v0 = vld [vmem:[#allocation5 + $0x78] sm:$0xff]  ;;  %v229_v1 = vld [vmem:[#allocation5 + $0x70] sm:$0xff]  ;;  %vm236_vm0 = vcmask 64512   ;;  %s401_s17 = sshll.u32 %s746_s10, 4 }
  0x30   : > { %243 = vmatpush.msra.mxu0 %v230_v0  ;;  %412 = vmatpush.msra.mxu2 %v230_v0  ;;  %v228_v2 = vld [vmem:[#allocation5 + $0x68] sm:$0xff]  ;;  %v227_v3 = vld [vmem:[#allocation5 + $0x60] sm:$0xff]  ;;  %v226_v5 = vld [vmem:[#allocation5 + $0x58] sm:$0xff]  ;;  %s411_s21 = sshll.u32 %s672_s16, 4  ;;  %s208_s28 = scalar_lea.vmem [#allocation7], %s401_s17 }
  0x31   : > { %v231_v4 = vld [vmem:[#allocation5 + $0x80] sm:$0xff]  ;;  %v212_v6 = vld [vmem:[%s750_s25 + $0x8] sm:$0xff]  ;;  %v225_v7 = vld [vmem:[#allocation5 + $0x50] sm:$0xff]  ;;  %s303_s27 = scalar_lea.hbm %s806_s3, %s411_s21  ;;  %s304_s29 = sshll.u32 %s208_s28, 4  ;;  %s305_s29 = int_to_ptr.vmem [resolvable:$true] %s304_s29 }
  0x32   : > { %244 = vmatpush.msra.mxu0 %v229_v1  ;;  %413 = vmatpush.msra.mxu2 %v229_v1  ;;  %v224_v8 = vld [vmem:[#allocation5 + $0x48] sm:$0xff]  ;;  %v223_v9 = vld [vmem:[#allocation5 + $0x40] sm:$0xff]  ;;  %v214_v10 = vld [vmem:[%s750_s25 + $0x18] sm:$0xff]  ;;  %s306_s30 = sshll.u32 %s303_s27, 4  ;;  %s292_s16 = scalar_lea.sflag [#allocation4], %s746_s10  ;;  %s307_s30 = int_to_ptr.hbm [resolvable:$true] %s306_s30 }
  0x33   : > { %281 = vmatpush.msra.mxu1 %v231_v4  ;;  %v222_v11 = vld [vmem:[#allocation5 + $0x38] sm:$0xff]  ;;  %v221_v12 = vld [vmem:[#allocation5 + $0x30] sm:$0xff]  ;;  %v220_v13 = vld [vmem:[#allocation5 + $0x28] sm:$0xff]  ;;  %s566_s7 = sshra.s32 %s307_s30, 4  ;;  %s572_s11 = scalar_lea.hbm %s806_s3, 32  ;;  %s567_s7 = int_to_ptr.hbm [resolvable:$true] %s566_s7 }
  0x34   : > { %245 = vmatpush.msra.mxu0 %v228_v2  ;;  %414 = vmatpush.msra.mxu2 %v228_v2  ;;  %v219_v14 = vld [vmem:[#allocation5 + $0x20] sm:$0xff]  ;;  %v218_v15 = vld [vmem:[#allocation5 + $0x18] sm:$0xff]  ;;  %v217_v16 = vld [vmem:[#allocation5 + $0x10] sm:$0xff]  ;;  %s568_s8 = scalar_lea.hbm %s567_s7, 16  ;;  %p573_p11 = scmp.lt.s32.totalorder %s567_s7, %s806_s3 }
  0x35   : > { %402 = vmatmul.msk.f32.vlgmr.msra.gmra.mxu1 %vm236_vm0, %v212_v6  ;;  %v216_v17 = vld [vmem:[#allocation5 + $0x8] sm:$0xff]  ;;  %v215_v18 = vld [vmem:[#allocation5] sm:$0xff]  ;;  %v213_v20 = vld [vmem:[%s750_s25 + $0x10] sm:$0xff]  ;;  %p569_p1 = scmp.ne.s32.totalorder %s567_s7, %s568_s8  ;;  %p574_p9 = scmp.lt.s32.totalorder %s572_s11, %s568_s8 }
  0x36   : > { %246 = vmatpush.msra.mxu0 %v227_v3  ;;  %415 = vmatpush.msra.mxu2 %v227_v3  ;;  %v211_v19 = vld [vmem:[%s750_s25] sm:$0xff] }
  0x37   : > { %v491_v22 = vld [vmem:[%s805_s2] ss:$0 sm:$0xff]  ;;  %p570_p4 = pnand %p569_p1, %p718_p7  ;;  %p575_p2 = por %p574_p9, %p573_p11 }
  0x38   : > { %247 = vmatpush.msra.mxu0 %v226_v5  ;;  %416 = vmatpush.msra.mxu2 %v226_v5 }
  0x39   : > { %p571_p8 = pneg %p570_p4 }
  0x3a   : > { %248 = vmatpush.msra.mxu0 %v225_v7  ;;  %417 = vmatpush.msra.mxu2 %v225_v7 }
  0x3b   : > { %p576_p10 = pnand %p575_p2, %p571_p8 }
  0x3c   : > { %249 = vmatpush.msra.mxu0 %v224_v8  ;;  %418 = vmatpush.msra.mxu2 %v224_v8 }
  0x3d   : > { %403 = vmatmul.msk.f32.gmra.mxu1 %vm236_vm0, %v214_v10 }
  0x3e   : > { %250 = vmatpush.msra.mxu0 %v223_v9  ;;  %419 = vmatpush.msra.mxu2 %v223_v9 }
  0x40   : > { %251 = vmatpush.msra.mxu0 %v222_v11  ;;  %420 = vmatpush.msra.mxu2 %v222_v11 }
  0x42   : > { %252 = vmatpush.msra.mxu0 %v221_v12  ;;  %421 = vmatpush.msra.mxu2 %v221_v12 }
  0x44   : > { %253 = vmatpush.msra.mxu0 %v220_v13  ;;  %422 = vmatpush.msra.mxu2 %v220_v13 }
  0x46   : > { %254 = vmatpush.msra.mxu0 %v219_v14  ;;  %423 = vmatpush.msra.mxu2 %v219_v14 }
  0x48   : > { %255 = vmatpush.msra.mxu0 %v218_v15  ;;  %424 = vmatpush.msra.mxu2 %v218_v15 }
  0x4a   : > { %256 = vmatpush.msra.mxu0 %v217_v16  ;;  %425 = vmatpush.msra.mxu2 %v217_v16 }
  0x4c   : > { %257 = vmatpush.msra.mxu0 %v216_v17  ;;  %426 = vmatpush.msra.mxu2 %v216_v17 }
  0x4e   : > { %258 = vmatpush.msra.mxu0 %v215_v18  ;;  %427 = vmatpush.msra.mxu2 %v215_v18 }
  0x4f   : > { %259 = vmatmul.f32.vlgmr.msra.gmra.mxu0 %v211_v19  ;;  %262 = vmatmul.f32.vlgmr.msra.gmra.mxu2 %v213_v20 }
  0xb2   : > { %v283_v21 = vpop.f32.mrf.mxu1 }
  0xba   : > { %v286_v27 = vpop.f32.mrf.mxu1 }
  0xcc   : > { %v260_v23 = vpop.f32.mrf.mxu0 }
  0xcd   : > { %v261_v24 = vadd.f32 %v491_v22, %v260_v23 }
  0xcf   : > { %v284_v25 = vadd.f32 %v283_v21, %v261_v24 }
  0xd1   : > { %289 = vst [vmem:[%s208_s28] sm:$0xff] %v284_v25 }
  0xd2   : > { %v263_v26 = vpop.f32.mrf.mxu2 }
  0xd3   : > { %v264_v28 = vadd.f32 %v491_v22, %v263_v26 }
  0xd5   : > { %v287_v29 = vadd.f32 %v286_v27, %v264_v28 }
  0xd7   : > { %290 = vst [vmem:[%s208_s28 + $0x8] sm:$0xff] %v287_v29 }
  0xd8   : > { %579 = shalt.err (!%p576_p10)
}
  0xd9   : > { %s629_s10 = smov 128   ;;  %s630_s18 = smov 8  }
  0xda   : > { %434 = dma.vmem_to_hbm [thread:$0]  (%p718_p7), %s305_s29, 256, %s307_s30, %s292_s16, %s629_s10, %s629_s10, %s630_s18  }
  0xdb PF: > { %s321_s23 = sand.u32 1, %s610_s12   ;;  %p812_p12 = scmp.ge.s32.totalorder %s622_s15, 2 }
  0xdc   : > { %s322_s17 = scalar_lea.sflag [#allocation4], %s321_s23 }
  0xdd   : > { %p445_p13 = pnand %p812_p12, %p686_p6 }
  0xdf   : > { %p446_p0 = pneg %p445_p13 }
  0xe1   : > { %605 = dma.done.wait (%p446_p0), %s322_s17, 256  }
  0xe2   : > { %607 = vsyncadd (%p446_p0), %s322_s17, 4294967040  ;;  %p17_p3 = scmp.ge.s32.totalorder %s704_s26, 4   ;;  %s813_s12 = smov %s614_s13 }
  0xe3   : > { %s814_s13 = smov %s618_s14  ;;  %s815_s14 = smov %s714_s4 }
  0xe4   : > { %s816_s15 = smov %s704_s26  ;;  %19 = sbr.rel (!%p17_p3) target bundleno = 6 (0x6), region = 81 }
  0xe9   :  { %328 = vsyncpa [#allocation3], 1 }
  0xea   :  { %330 = vsyncpa [#allocation3 + $0x1], 1 }
  0xeb   :  { %331 = vsyncpa [#allocation6], 1 }
  0xec   :  { %332 = vsyncpa [#allocation4], 1 }
  0xed   :  { %334 = vsyncpa [#allocation4 + $0x1], 1 }

</bundles_post_ra>
